<compile_context>
chip_gen: v5e
topology: v5e:2x2
jax: 0.10.0
libtpu: 0.0.40
codegen_flags: <defaults>
</compile_context>

<pallas_src>
import functools

import jax
import jax.numpy as jnp
from jax import lax
from jax.experimental import pallas as pl
from jax.experimental.pallas import tpu as pltpu


def _round_up(x, m):
    return (x + m - 1) // m * m


def _doubleconv_kernel(x_ref, w1_ref, s1_ref, b1_ref,
                       w2_ref, s2_ref, b2_ref, o_ref, mid_ref):
    """One batch block (nb images) per grid step.

    x_ref  : (nb, H+2, K1)  f32   lane-flat input rows (H zero-padded, lanes
                                  = W*Cin zero-padded up to K1)
    w1_ref : (3, K1, N1)    bf16  banded conv1 weights, N1 = W*Cmid
    s1_ref : (1, N1)        f32   folded BN1 scale (tiled over W)
    b1_ref : (1, N1)        f32   folded BN1 bias
    w2_ref : (3, K2, N2)    bf16  banded conv2 weights, N2 = W*Cout
    s2_ref : (1, N2)        f32   folded BN2 scale
    b2_ref : (1, N2)        f32   folded BN2 bias
    o_ref  : (nb, H, N2)    f32   lane-dense output slab
    mid_ref: (nb, H+2, K2)  f32   scratch: row-padded intermediate
    """
    nb, hp2, k1 = x_ref.shape
    H = hp2 - 2
    n1 = w1_ref.shape[2]
    k2 = w2_ref.shape[1]
    n2 = w2_ref.shape[2]
    R = nb * H

    # ---- conv1: 3 row-shifted matmuls, K = K1 (lane-dense, bf16 on MXU) ----
    acc1 = jnp.zeros((R, n1), jnp.float32)
    for dy in range(3):
        slab = x_ref[:, dy:dy + H, :].reshape(R, k1).astype(jnp.bfloat16)
        acc1 += jnp.dot(slab, w1_ref[dy], preferred_element_type=jnp.float32)

    # BN1 (folded, per-lane) + ReLU, in f32.
    y = jnp.maximum(acc1 * s1_ref[...] + b1_ref[...], 0.0)

    # ---- stage intermediate: only the halo is zeroed, interior store is
    # lane-aligned (offset 0).  Column halos are implicit (handled by zero
    # rows of the banded weight), so no full-scratch memset is needed. ----
    mid_ref[:, 0:1, :] = jnp.zeros((nb, 1, k2), mid_ref.dtype)
    mid_ref[:, H + 1:H + 2, :] = jnp.zeros((nb, 1, k2), mid_ref.dtype)
    if k2 > n1:  # lane tail (alignment padding) must stay zero
        mid_ref[:, :, n1:] = jnp.zeros((nb, hp2, k2 - n1), mid_ref.dtype)
    mid_ref[:, 1:1 + H, 0:n1] = y.reshape(nb, H, n1)

    # ---- conv2: 3 row-shifted matmuls over the staged intermediate ----
    acc2 = jnp.zeros((R, n2), jnp.float32)
    for dy in range(3):
        slab = mid_ref[:, dy:dy + H, :].reshape(R, k2).astype(jnp.bfloat16)
        acc2 += jnp.dot(slab, w2_ref[dy], preferred_element_type=jnp.float32)

    # BN2 (folded) + ReLU, then one lane-dense store.
    z = jnp.maximum(acc2 * s2_ref[...] + b2_ref[...], 0.0)
    o_ref[...] = z.reshape(nb, H, n2).astype(o_ref.dtype)


def _banded_weight(w_hwio, W, Kg, out_dtype):
    """Build the banded (block-Toeplitz) weight for a 3x3 SAME conv applied to
    lane-flattened rows.

    Returns B of shape (3, Kg, W*Co) with
      B[dy, g*Ci+ci, w*Co+co] = w[dy, g+1-w, ci, co] if 0 <= g+1-w <= 2 else 0
    (g = input column, w = output column; column halos are implicit zeros).
    Rows [W*Ci, Kg) are zero padding for 128-lane alignment.
    """
    _, _, Ci, Co = w_hwio.shape
    g = jnp.arange(W)
    wcol = jnp.arange(W)
    dx = g[:, None] + 1 - wcol[None, :]                      # (W, W)
    valid = (dx >= 0) & (dx <= 2)
    gathered = w_hwio[:, jnp.clip(dx, 0, 2), :, :]           # (3, W, W, Ci, Co)
    gathered = jnp.where(valid[None, :, :, None, None], gathered, 0.0)
    band = jnp.transpose(gathered, (0, 1, 3, 2, 4)).reshape(3, W * Ci, W * Co)
    band = jnp.pad(band, ((0, 0), (0, Kg - W * Ci), (0, 0)))
    return band.astype(out_dtype)


def _pick_batch_block(N, H, K1, K2, N1, N2, budget_bytes):
    """Largest batch block whose VMEM working set fits the budget and divides N."""
    per_n = ((H + 2) * K1 * 4 * 2      # input block, double buffered (f32)
             + H * N2 * 4 * 2          # output block, double buffered (f32)
             + (H + 2) * K2 * 4        # mid scratch (f32)
             + H * (K1 + K2) * 2       # live bf16 slab operands
             + H * (N1 + N2) * 4 * 2)  # f32 accumulators / activations
    weights = 3 * (K1 * N1 + K2 * N2) * 2 * 2   # double-buffered bf16 weights
    avail = max(budget_bytes - weights, per_n)
    nb = int(max(1, min(N, avail // per_n)))
    while N % nb:
        nb -= 1
    return nb


@functools.partial(jax.jit, static_argnames=("eps",))
def double_conv(x_nchw, w1, g1, be1, m1, v1, w2, g2, be2, m2, v2, eps=1e-5):
    """Forward of DoubleConv. Input/output in PyTorch NCHW layout."""
    N, Cin, H, W = x_nchw.shape
    Cmid = w1.shape[-1]
    Cout = w2.shape[-1]

    K1 = _round_up(W * Cin, 128)    # conv1 contraction depth (lane aligned)
    K2 = _round_up(W * Cmid, 128)   # conv2 contraction depth / mid lane width
    N1 = W * Cmid
    N2 = W * Cout

    # NCHW -> lane-flat rows (N, H, W*Cin); pad H by 1 (conv halo) and pad the
    # lane dim up to K1.  Staged in f32; bf16 cast happens next to the MXU.
    x_flat = jnp.transpose(x_nchw, (0, 2, 3, 1)).reshape(N, H, W * Cin)
    x_flat = jnp.pad(x_flat, ((0, 0), (1, 1), (0, K1 - W * Cin)))

    # Banded weights (bf16 for the MXU), built once per call in plain JAX.
    w1b = _banded_weight(w1, W, K1, jnp.bfloat16)   # (3, K1, N1)
    w2b = _banded_weight(w2, W, K2, jnp.bfloat16)   # (3, K2, N2)

    # Fold eval-mode BatchNorm into per-lane scale/bias (tiled over W).
    inv1 = g1 / jnp.sqrt(v1 + eps)
    s1 = jnp.tile(inv1, W).reshape(1, N1)
    b1 = jnp.tile(be1 - m1 * inv1, W).reshape(1, N1)
    inv2 = g2 / jnp.sqrt(v2 + eps)
    s2 = jnp.tile(inv2, W).reshape(1, N2)
    b2 = jnp.tile(be2 - m2 * inv2, W).reshape(1, N2)

    # Per-generation VMEM budget -> batch-block size + scoped VMEM limit
    # (64 MiB on v7x vs 128 MiB on v5e/v6e).
    try:
        info = pltpu.get_tpu_info()
        vmem_cap = int(getattr(info, "vmem_capacity_bytes", 64 * 1024 * 1024))
    except Exception:  # pragma: no cover - conservative fallback
        vmem_cap = 64 * 1024 * 1024
    vmem_limit = int(min(vmem_cap * 3 // 4, 100 * 1024 * 1024))
    nb = _pick_batch_block(N, H, K1, K2, N1, N2, vmem_limit // 2)

    out_flat = pl.pallas_call(
        _doubleconv_kernel,
        out_shape=jax.ShapeDtypeStruct((N, H, N2), jnp.float32),
        grid=(N // nb,),
        in_specs=[
            pl.BlockSpec((nb, H + 2, K1), lambda g: (g, 0, 0)),
            pl.BlockSpec((3, K1, N1), lambda g: (0, 0, 0)),
            pl.BlockSpec((1, N1), lambda g: (0, 0)),
            pl.BlockSpec((1, N1), lambda g: (0, 0)),
            pl.BlockSpec((3, K2, N2), lambda g: (0, 0, 0)),
            pl.BlockSpec((1, N2), lambda g: (0, 0)),
            pl.BlockSpec((1, N2), lambda g: (0, 0)),
        ],
        out_specs=pl.BlockSpec((nb, H, N2), lambda g: (g, 0, 0)),
        scratch_shapes=[pltpu.VMEM((nb, H + 2, K2), jnp.float32)],
        compiler_params=pltpu.CompilerParams(
            dimension_semantics=("parallel",),
            vmem_limit_bytes=vmem_limit),
    )(x_flat, w1b, s1, b1, w2b, s2, b2)

    # (N, H, W*Cout) -> NHWC -> NCHW (pure layout plumbing in the wrapper).
    return jnp.transpose(out_flat.reshape(N, H, W, Cout), (0, 3, 1, 2))


def _reference(x_nchw, w1, g1, be1, m1, v1, w2, g2, be2, m2, v2,
               eps=1e-5, mixed=True):
    """Pure-JAX reference (lax.conv).  mixed=True mirrors the kernel's bf16
    operands / f32 accumulation; mixed=False is the full-f32 semantics."""
    dn = ("NHWC", "HWIO", "NHWC")
    cdt = jnp.bfloat16 if mixed else jnp.float32
    x = jnp.transpose(x_nchw, (0, 2, 3, 1))
    inv1 = g1 / jnp.sqrt(v1 + eps)
    inv2 = g2 / jnp.sqrt(v2 + eps)
    y = lax.conv_general_dilated(x.astype(cdt), w1.astype(cdt), (1, 1), "SAME",
                                 dimension_numbers=dn,
                                 preferred_element_type=jnp.float32)
    y = jnp.maximum(y * inv1 + (be1 - m1 * inv1), 0.0)
    z = lax.conv_general_dilated(y.astype(cdt), w2.astype(cdt), (1, 1), "SAME",
                                 dimension_numbers=dn,
                                 preferred_element_type=jnp.float32)
    z = jnp.maximum(z * inv2 + (be2 - m2 * inv2), 0.0)
    return jnp.transpose(z, (0, 3, 1, 2))


if __name__ == "__main__":
    # Small deterministic setup: DoubleConv(in_channels=4, out_channels=8)
    N, Cin, Cout, H, W = 2, 4, 8, 16, 16
    key = jax.random.PRNGKey(0)
    keys = jax.random.split(key, 11)

    x = jax.random.normal(keys[0], (N, Cin, H, W), jnp.float32)

    # Conv weights in HWIO (PyTorch OIHW weights transposed).
    w1 = jax.random.normal(keys[1], (3, 3, Cin, Cout), jnp.float32) * 0.1
    w2 = jax.random.normal(keys[2], (3, 3, Cout, Cout), jnp.float32) * 0.1

    # BatchNorm affine params / running stats.
    g1 = 1.0 + 0.1 * jax.random.normal(keys[3], (Cout,), jnp.float32)
    be1 = 0.1 * jax.random.normal(keys[4], (Cout,), jnp.float32)
    m1 = 0.1 * jax.random.normal(keys[5], (Cout,), jnp.float32)
    v1 = 1.0 + 0.5 * jax.random.uniform(keys[6], (Cout,), jnp.float32)
    g2 = 1.0 + 0.1 * jax.random.normal(keys[7], (Cout,), jnp.float32)
    be2 = 0.1 * jax.random.normal(keys[8], (Cout,), jnp.float32)
    m2 = 0.1 * jax.random.normal(keys[9], (Cout,), jnp.float32)
    v2 = 1.0 + 0.5 * jax.random.uniform(keys[10], (Cout,), jnp.float32)

    out = double_conv(x, w1, g1, be1, m1, v1, w2, g2, be2, m2, v2)
    out = jax.block_until_ready(out)
    assert out.shape == (N, Cout, H, W), out.shape

    # Exact-semantics check (same bf16 operands / f32 accumulation as kernel).
    ref_mx = _reference(x, w1, g1, be1, m1, v1, w2, g2, be2, m2, v2, mixed=True)
    err_mx = float(jnp.max(jnp.abs(out - ref_mx)))
    assert jnp.allclose(out, ref_mx, atol=5e-3, rtol=5e-3), err_mx

    # Sanity check vs full-f32 reference (loose: bf16 rounding only).
    ref_f32 = _reference(x, w1, g1, be1, m1, v1, w2, g2, be2, m2, v2, mixed=False)
    err_f32 = float(jnp.max(jnp.abs(out - ref_f32)))
    assert jnp.allclose(out, ref_f32, atol=1e-1, rtol=1e-1), err_f32

    print("KERNEL_OK")
</pallas_src>

<mosaic_0001>
module attributes {stable_mosaic.version = 11 : i64} {
  func.func @_doubleconv_kernel(%arg0: i32, %arg1: memref<2x18x128xf32, #tpu.memory_space<vmem>>, %arg2: memref<3x128x128xbf16, #tpu.memory_space<vmem>>, %arg3: memref<1x128xf32, #tpu.memory_space<vmem>>, %arg4: memref<1x128xf32, #tpu.memory_space<vmem>>, %arg5: memref<3x128x128xbf16, #tpu.memory_space<vmem>>, %arg6: memref<1x128xf32, #tpu.memory_space<vmem>>, %arg7: memref<1x128xf32, #tpu.memory_space<vmem>>, %arg8: memref<2x16x128xf32, #tpu.memory_space<vmem>>, %arg9: memref<2x18x128xf32, #tpu.memory_space<vmem>>) attributes {dimension_semantics = [#tpu.dimension_semantics<parallel>], iteration_bounds = array<i64: 1>, scalar_prefetch = 0 : i64, scratch_operands = 1 : i64, tpu.core_type = #tpu.core_type<tc>, window_params = [{transform_indices = @transform_0, window_bounds = array<i64: 2, 18, 128>}, {pipeline_mode = #tpu.pipeline_mode<synchronous>, transform_indices = @transform_1, window_bounds = array<i64: 3, 128, 128>}, {pipeline_mode = #tpu.pipeline_mode<synchronous>, transform_indices = @transform_2, window_bounds = array<i64: 1, 128>}, {pipeline_mode = #tpu.pipeline_mode<synchronous>, transform_indices = @transform_3, window_bounds = array<i64: 1, 128>}, {pipeline_mode = #tpu.pipeline_mode<synchronous>, transform_indices = @transform_4, window_bounds = array<i64: 3, 128, 128>}, {pipeline_mode = #tpu.pipeline_mode<synchronous>, transform_indices = @transform_5, window_bounds = array<i64: 1, 128>}, {pipeline_mode = #tpu.pipeline_mode<synchronous>, transform_indices = @transform_6, window_bounds = array<i64: 1, 128>}, {transform_indices = @transform_7, window_bounds = array<i64: 2, 16, 128>}]} {
    %cst = arith.constant 0.000000e+00 : f32
    %0 = vector.broadcast %cst : f32 to vector<32x128xf32>
    %c0 = arith.constant 0 : index
    %c0_0 = arith.constant 0 : index
    %c0_1 = arith.constant 0 : index
    %1 = vector.load %arg1[%c0, %c0_0, %c0_1] : memref<2x18x128xf32, #tpu.memory_space<vmem>>, vector<2x16x128xf32>
    %2 = vector.shape_cast %1 : vector<2x16x128xf32> to vector<32x128xf32>
    %3 = arith.truncf %2 : vector<32x128xf32> to vector<32x128xbf16>
    %c0_2 = arith.constant 0 : index
    %c0_3 = arith.constant 0 : index
    %c0_4 = arith.constant 0 : index
    %4 = vector.load %arg2[%c0_2, %c0_3, %c0_4] : memref<3x128x128xbf16, #tpu.memory_space<vmem>>, vector<1x128x128xbf16>
    %5 = vector.shape_cast %4 : vector<1x128x128xbf16> to vector<128x128xbf16>
    %cst_5 = arith.constant dense<0.000000e+00> : vector<32x128xf32>
    %6 = tpu.matmul %3, %5, %cst_5 {dimension_numbers = #tpu.dot_dimension_numbers<[1], [0], [0], [1], [0, 0, 1, 1], [], []>} : vector<32x128xbf16>, vector<128x128xbf16>, vector<32x128xf32> -> vector<32x128xf32>
    %7 = arith.addf %0, %6 : vector<32x128xf32>
    %c0_6 = arith.constant 0 : index
    %c1 = arith.constant 1 : index
    %c0_7 = arith.constant 0 : index
    %8 = vector.load %arg1[%c0_6, %c1, %c0_7] : memref<2x18x128xf32, #tpu.memory_space<vmem>>, vector<2x16x128xf32>
    %9 = vector.shape_cast %8 : vector<2x16x128xf32> to vector<32x128xf32>
    %10 = arith.truncf %9 : vector<32x128xf32> to vector<32x128xbf16>
    %c1_8 = arith.constant 1 : index
    %c0_9 = arith.constant 0 : index
    %c0_10 = arith.constant 0 : index
    %11 = vector.load %arg2[%c1_8, %c0_9, %c0_10] : memref<3x128x128xbf16, #tpu.memory_space<vmem>>, vector<1x128x128xbf16>
    %12 = vector.shape_cast %11 : vector<1x128x128xbf16> to vector<128x128xbf16>
    %cst_11 = arith.constant dense<0.000000e+00> : vector<32x128xf32>
    %13 = tpu.matmul %10, %12, %cst_11 {dimension_numbers = #tpu.dot_dimension_numbers<[1], [0], [0], [1], [0, 0, 1, 1], [], []>} : vector<32x128xbf16>, vector<128x128xbf16>, vector<32x128xf32> -> vector<32x128xf32>
    %14 = arith.addf %7, %13 : vector<32x128xf32>
    %c0_12 = arith.constant 0 : index
    %c2 = arith.constant 2 : index
    %c0_13 = arith.constant 0 : index
    %15 = vector.load %arg1[%c0_12, %c2, %c0_13] : memref<2x18x128xf32, #tpu.memory_space<vmem>>, vector<2x16x128xf32>
    %16 = vector.shape_cast %15 : vector<2x16x128xf32> to vector<32x128xf32>
    %17 = arith.truncf %16 : vector<32x128xf32> to vector<32x128xbf16>
    %c2_14 = arith.constant 2 : index
    %c0_15 = arith.constant 0 : index
    %c0_16 = arith.constant 0 : index
    %18 = vector.load %arg2[%c2_14, %c0_15, %c0_16] : memref<3x128x128xbf16, #tpu.memory_space<vmem>>, vector<1x128x128xbf16>
    %19 = vector.shape_cast %18 : vector<1x128x128xbf16> to vector<128x128xbf16>
    %cst_17 = arith.constant dense<0.000000e+00> : vector<32x128xf32>
    %20 = tpu.matmul %17, %19, %cst_17 {dimension_numbers = #tpu.dot_dimension_numbers<[1], [0], [0], [1], [0, 0, 1, 1], [], []>} : vector<32x128xbf16>, vector<128x128xbf16>, vector<32x128xf32> -> vector<32x128xf32>
    %21 = arith.addf %14, %20 : vector<32x128xf32>
    %c0_18 = arith.constant 0 : index
    %c0_19 = arith.constant 0 : index
    %22 = vector.load %arg3[%c0_18, %c0_19] : memref<1x128xf32, #tpu.memory_space<vmem>>, vector<1x128xf32>
    %23 = vector.broadcast %22 : vector<1x128xf32> to vector<32x128xf32>
    %24 = arith.mulf %21, %23 : vector<32x128xf32>
    %c0_20 = arith.constant 0 : index
    %c0_21 = arith.constant 0 : index
    %25 = vector.load %arg4[%c0_20, %c0_21] : memref<1x128xf32, #tpu.memory_space<vmem>>, vector<1x128xf32>
    %26 = vector.broadcast %25 : vector<1x128xf32> to vector<32x128xf32>
    %27 = arith.addf %24, %26 : vector<32x128xf32>
    %cst_22 = arith.constant 0.000000e+00 : f32
    %28 = vector.broadcast %cst_22 : f32 to vector<32x128xf32>
    %29 = arith.maximumf %27, %28 : vector<32x128xf32>
    %cst_23 = arith.constant 0.000000e+00 : f32
    %30 = vector.broadcast %cst_23 : f32 to vector<2x1x128xf32>
    %c0_24 = arith.constant 0 : index
    %c0_25 = arith.constant 0 : index
    %c0_26 = arith.constant 0 : index
    %31 = vector.load %arg9[%c0_24, %c0_25, %c0_26] : memref<2x18x128xf32, #tpu.memory_space<vmem>>, vector<2x1x128xf32>
    tpu.vector_store %arg9[%c0_24, %c0_25, %c0_26], %30 {strides = array<i32>} : memref<2x18x128xf32, #tpu.memory_space<vmem>>, vector<2x1x128xf32>,
    %cst_27 = arith.constant 0.000000e+00 : f32
    %32 = vector.broadcast %cst_27 : f32 to vector<2x1x128xf32>
    %c0_28 = arith.constant 0 : index
    %c17 = arith.constant 17 : index
    %c0_29 = arith.constant 0 : index
    %33 = vector.load %arg9[%c0_28, %c17, %c0_29] : memref<2x18x128xf32, #tpu.memory_space<vmem>>, vector<2x1x128xf32>
    tpu.vector_store %arg9[%c0_28, %c17, %c0_29], %32 {strides = array<i32>} : memref<2x18x128xf32, #tpu.memory_space<vmem>>, vector<2x1x128xf32>,
    %34 = vector.shape_cast %29 : vector<32x128xf32> to vector<2x16x128xf32>
    %c0_30 = arith.constant 0 : index
    %c1_31 = arith.constant 1 : index
    %c0_32 = arith.constant 0 : index
    %35 = vector.load %arg9[%c0_30, %c1_31, %c0_32] : memref<2x18x128xf32, #tpu.memory_space<vmem>>, vector<2x16x128xf32>
    tpu.vector_store %arg9[%c0_30, %c1_31, %c0_32], %34 {strides = array<i32>} : memref<2x18x128xf32, #tpu.memory_space<vmem>>, vector<2x16x128xf32>,
    %cst_33 = arith.constant 0.000000e+00 : f32
    %36 = vector.broadcast %cst_33 : f32 to vector<32x128xf32>
    %c0_34 = arith.constant 0 : index
    %c0_35 = arith.constant 0 : index
    %c0_36 = arith.constant 0 : index
    %37 = vector.load %arg9[%c0_34, %c0_35, %c0_36] : memref<2x18x128xf32, #tpu.memory_space<vmem>>, vector<2x16x128xf32>
    %38 = vector.shape_cast %37 : vector<2x16x128xf32> to vector<32x128xf32>
    %39 = arith.truncf %38 : vector<32x128xf32> to vector<32x128xbf16>
    %c0_37 = arith.constant 0 : index
    %c0_38 = arith.constant 0 : index
    %c0_39 = arith.constant 0 : index
    %40 = vector.load %arg5[%c0_37, %c0_38, %c0_39] : memref<3x128x128xbf16, #tpu.memory_space<vmem>>, vector<1x128x128xbf16>
    %41 = vector.shape_cast %40 : vector<1x128x128xbf16> to vector<128x128xbf16>
    %cst_40 = arith.constant dense<0.000000e+00> : vector<32x128xf32>
    %42 = tpu.matmul %39, %41, %cst_40 {dimension_numbers = #tpu.dot_dimension_numbers<[1], [0], [0], [1], [0, 0, 1, 1], [], []>} : vector<32x128xbf16>, vector<128x128xbf16>, vector<32x128xf32> -> vector<32x128xf32>
    %43 = arith.addf %36, %42 : vector<32x128xf32>
    %c0_41 = arith.constant 0 : index
    %c1_42 = arith.constant 1 : index
    %c0_43 = arith.constant 0 : index
    %44 = vector.load %arg9[%c0_41, %c1_42, %c0_43] : memref<2x18x128xf32, #tpu.memory_space<vmem>>, vector<2x16x128xf32>
    %45 = vector.shape_cast %44 : vector<2x16x128xf32> to vector<32x128xf32>
    %46 = arith.truncf %45 : vector<32x128xf32> to vector<32x128xbf16>
    %c1_44 = arith.constant 1 : index
    %c0_45 = arith.constant 0 : index
    %c0_46 = arith.constant 0 : index
    %47 = vector.load %arg5[%c1_44, %c0_45, %c0_46] : memref<3x128x128xbf16, #tpu.memory_space<vmem>>, vector<1x128x128xbf16>
    %48 = vector.shape_cast %47 : vector<1x128x128xbf16> to vector<128x128xbf16>
    %cst_47 = arith.constant dense<0.000000e+00> : vector<32x128xf32>
    %49 = tpu.matmul %46, %48, %cst_47 {dimension_numbers = #tpu.dot_dimension_numbers<[1], [0], [0], [1], [0, 0, 1, 1], [], []>} : vector<32x128xbf16>, vector<128x128xbf16>, vector<32x128xf32> -> vector<32x128xf32>
    %50 = arith.addf %43, %49 : vector<32x128xf32>
    %c0_48 = arith.constant 0 : index
    %c2_49 = arith.constant 2 : index
    %c0_50 = arith.constant 0 : index
    %51 = vector.load %arg9[%c0_48, %c2_49, %c0_50] : memref<2x18x128xf32, #tpu.memory_space<vmem>>, vector<2x16x128xf32>
    %52 = vector.shape_cast %51 : vector<2x16x128xf32> to vector<32x128xf32>
    %53 = arith.truncf %52 : vector<32x128xf32> to vector<32x128xbf16>
    %c2_51 = arith.constant 2 : index
    %c0_52 = arith.constant 0 : index
    %c0_53 = arith.constant 0 : index
    %54 = vector.load %arg5[%c2_51, %c0_52, %c0_53] : memref<3x128x128xbf16, #tpu.memory_space<vmem>>, vector<1x128x128xbf16>
    %55 = vector.shape_cast %54 : vector<1x128x128xbf16> to vector<128x128xbf16>
    %cst_54 = arith.constant dense<0.000000e+00> : vector<32x128xf32>
    %56 = tpu.matmul %53, %55, %cst_54 {dimension_numbers = #tpu.dot_dimension_numbers<[1], [0], [0], [1], [0, 0, 1, 1], [], []>} : vector<32x128xbf16>, vector<128x128xbf16>, vector<32x128xf32> -> vector<32x128xf32>
    %57 = arith.addf %50, %56 : vector<32x128xf32>
    %c0_55 = arith.constant 0 : index
    %c0_56 = arith.constant 0 : index
    %58 = vector.load %arg6[%c0_55, %c0_56] : memref<1x128xf32, #tpu.memory_space<vmem>>, vector<1x128xf32>
    %59 = vector.broadcast %58 : vector<1x128xf32> to vector<32x128xf32>
    %60 = arith.mulf %57, %59 : vector<32x128xf32>
    %c0_57 = arith.constant 0 : index
    %c0_58 = arith.constant 0 : index
    %61 = vector.load %arg7[%c0_57, %c0_58] : memref<1x128xf32, #tpu.memory_space<vmem>>, vector<1x128xf32>
    %62 = vector.broadcast %61 : vector<1x128xf32> to vector<32x128xf32>
    %63 = arith.addf %60, %62 : vector<32x128xf32>
    %cst_59 = arith.constant 0.000000e+00 : f32
    %64 = vector.broadcast %cst_59 : f32 to vector<32x128xf32>
    %65 = arith.maximumf %63, %64 : vector<32x128xf32>
    %66 = vector.shape_cast %65 : vector<32x128xf32> to vector<2x16x128xf32>
    %c0_60 = arith.constant 0 : index
    %c0_61 = arith.constant 0 : index
    %c0_62 = arith.constant 0 : index
    %67 = vector.load %arg8[%c0_60, %c0_61, %c0_62] : memref<2x16x128xf32, #tpu.memory_space<vmem>>, vector<2x16x128xf32>
    tpu.vector_store %arg8[%c0_60, %c0_61, %c0_62], %66 {strides = array<i32>} : memref<2x16x128xf32, #tpu.memory_space<vmem>>, vector<2x16x128xf32>,
    return
  }
  func.func @transform_0(%arg0: i32) -> (i32, i32, i32) {
    %c0_i32 = arith.constant 0 : i32
    %c0_i32_0 = arith.constant 0 : i32
    %c0_i32_1 = arith.constant 0 : i32
    return %arg0, %c0_i32, %c0_i32_0 : i32, i32, i32
  }
  func.func @transform_1(%arg0: i32) -> (i32, i32, i32) {
    %c0_i32 = arith.constant 0 : i32
    %c0_i32_0 = arith.constant 0 : i32
    %c0_i32_1 = arith.constant 0 : i32
    %c0_i32_2 = arith.constant 0 : i32
    return %c0_i32, %c0_i32_0, %c0_i32_1 : i32, i32, i32
  }
  func.func @transform_2(%arg0: i32) -> (i32, i32) {
    %c0_i32 = arith.constant 0 : i32
    %c0_i32_0 = arith.constant 0 : i32
    %c0_i32_1 = arith.constant 0 : i32
    return %c0_i32, %c0_i32_0 : i32, i32
  }
  func.func @transform_3(%arg0: i32) -> (i32, i32) {
    %c0_i32 = arith.constant 0 : i32
    %c0_i32_0 = arith.constant 0 : i32
    %c0_i32_1 = arith.constant 0 : i32
    return %c0_i32, %c0_i32_0 : i32, i32
  }
  func.func @transform_4(%arg0: i32) -> (i32, i32, i32) {
    %c0_i32 = arith.constant 0 : i32
    %c0_i32_0 = arith.constant 0 : i32
    %c0_i32_1 = arith.constant 0 : i32
    %c0_i32_2 = arith.constant 0 : i32
    return %c0_i32, %c0_i32_0, %c0_i32_1 : i32, i32, i32
  }
  func.func @transform_5(%arg0: i32) -> (i32, i32) {
    %c0_i32 = arith.constant 0 : i32
    %c0_i32_0 = arith.constant 0 : i32
    %c0_i32_1 = arith.constant 0 : i32
    return %c0_i32, %c0_i32_0 : i32, i32
  }
  func.func @transform_6(%arg0: i32) -> (i32, i32) {
    %c0_i32 = arith.constant 0 : i32
    %c0_i32_0 = arith.constant 0 : i32
    %c0_i32_1 = arith.constant 0 : i32
    return %c0_i32, %c0_i32_0 : i32, i32
  }
  func.func @transform_7(%arg0: i32) -> (i32, i32, i32) {
    %c0_i32 = arith.constant 0 : i32
    %c0_i32_0 = arith.constant 0 : i32
    %c0_i32_1 = arith.constant 0 : i32
    return %arg0, %c0_i32, %c0_i32_0 : i32, i32, i32
  }
}

</mosaic_0001>

<bundles_post_ra>
// kernel: tile.23
= control target key start
LH: loop header
LB: loop body
LE: loop exit
PB: predicated region body
PF: predicated region fallthrough
CT: control target
= control target key end

     0   :  { %s28_s0 = inlined_call_operand.vmem [shape: f32[8], index: 0, kind: input, shape index: {}]   ;;  %s29_s1 = inlined_call_operand.vmem [shape: f32[16,8], index: 1, kind: output, shape index: {}]  }
   0x1   :  { %v4_v0 = vld [vmem:[%s28_s0] ss:$0 sm:$0xff] }
   0x2   :  { %5 = vst [vmem:[%s29_s1] sm:$0xff] %v4_v0 }
   0x3   :  { %8 = vst [vmem:[%s29_s1 + $0x8] sm:$0xff] %v4_v0 }

// kernel: tile.24
= control target key start
LH: loop header
LB: loop body
LE: loop exit
PB: predicated region body
PF: predicated region fallthrough
CT: control target
= control target key end

     0   :  { %s131_s10 = smov 120   ;;  %s132_s11 = smov 104   ;;  %vm3_vm0 = vcmask 64512   ;;  %vm9_vm1 = vcmask 1048512   ;;  %vm15_vm2 = vcmask 982912   ;;  %vm21_vm3 = vcmask 917312   ;;  %s207_s0 = inlined_call_operand.vmem [shape: f32[16,8], index: 0, kind: input, shape index: {}]   ;;  %s208_s1 = inlined_call_operand.vmem [shape: f32[1,128], index: 1, kind: output, shape index: {}]  }
   0x1   :  { %v101_v0 = vld [vmem:[%s207_s0 + $0xf] sm:$0x1]   ;;  %v103_v1 = vld [vmem:[%s207_s0 + $0xd] sm:$0x1]   ;;  %v105_v2 = vld [vmem:[%s207_s0 + $0xb] sm:$0x1]  }
   0x2   :  { %7 = vrot.lane.b32.xlu0 %v101_v0, %s131_s10  ;;  %19 = vrot.lane.b32.xlu1 %v103_v1, %s132_s11  ;;  %s133_s14 = smov 88   ;;  %v102_v3 = vld [vmem:[%s207_s0 + $0xe] sm:$0x1]   ;;  %v104_v4 = vld [vmem:[%s207_s0 + $0xc] sm:$0x1]   ;;  %s134_s19 = smov 112  }
   0x3   :  { %31 = vrot.lane.b32.xlu2 %v105_v2, %s133_s14  ;;  %s135_s20 = smov 96   ;;  %v106_v5 = vld [vmem:[%s207_s0 + $0xa] sm:$0x1]   ;;  %s136_s23 = smov 80   ;;  %v107_v6 = vld [vmem:[%s207_s0 + $0x9] sm:$0x1]  }
   0x4   :  { %v108_v7 = vld [vmem:[%s207_s0 + $0x8] sm:$0x1]   ;;  %s137_s28 = smov 72   ;;  %s138_s29 = smov 64   ;;  %v109_v8 = vld [vmem:[%s207_s0 + $0x7] sm:$0x1]  }
   0x5   :  { %s139_s3 = smov 56   ;;  %v110_v9 = vld [vmem:[%s207_s0 + $0x6] sm:$0x1]   ;;  %v111_v10 = vld [vmem:[%s207_s0 + $0x5] sm:$0x1]   ;;  %s140_s8 = smov 48  }
   0x6   :  { %s141_s9 = smov 40   ;;  %v112_v11 = vld [vmem:[%s207_s0 + $0x4] sm:$0x1]   ;;  %s142_s12 = smov 32   ;;  %v113_v12 = vld [vmem:[%s207_s0 + $0x3] sm:$0x1]  }
   0x7   :  { %v114_v13 = vld [vmem:[%s207_s0 + $0x2] sm:$0x1]   ;;  %s143_s17 = smov 24   ;;  %s144_s18 = smov 16   ;;  %v115_v14 = vld [vmem:[%s207_s0 + $0x1] sm:$0x1]  }
   0x8   :  { %s145_s21 = smov 8   ;;  %v2_v15 = vld [vmem:[%s207_s0] sm:$0x1]   ;;  %vm27_vm4 = vcmask 851712   ;;  %vm33_vm5 = vcmask 786112   ;;  %vm39_vm6 = vcmask 720512  }
   0x9   :  { %4 = vst.msk [vmem:[#allocation0] sm:$0x1] %vm3_vm0, %v2_v15   ;;  %vm45_vm7 = vcmask 654912   ;;  %vm51_vm8 = vcmask 589312   ;;  %vm57_vm9 = vcmask 523712   ;;  %vm63_vm10 = vcmask 458112  }
   0xa   :  { %13 = vrot.lane.b32.xlu0 %v102_v3, %s134_s19  ;;  %25 = vrot.lane.b32.xlu1 %v104_v4, %s135_s20  ;;  %vm69_vm11 = vcmask 392512   ;;  %vm75_vm12 = vcmask 326912   ;;  %vm81_vm13 = vcmask 261312   ;;  %vm87_vm14 = vcmask 195712  }
   0xb   :  { %37 = vrot.lane.b32.xlu2 %v106_v5, %s136_s23  ;;  %vm93_vm15 = vcmask 130112  }
  0x12   :  { %43 = vrot.lane.b32.xlu0 %v107_v6, %s137_s28  ;;  %49 = vrot.lane.b32.xlu1 %v108_v7, %s138_s29 }
  0x13   :  { %55 = vrot.lane.b32.xlu2 %v109_v8, %s139_s3 }
  0x1a   :  { %61 = vrot.lane.b32.xlu0 %v110_v9, %s140_s8  ;;  %67 = vrot.lane.b32.xlu1 %v111_v10, %s141_s9 }
  0x1b   :  { %73 = vrot.lane.b32.xlu2 %v112_v11, %s142_s12 }
  0x22   :  { %79 = vrot.lane.b32.xlu0 %v113_v12, %s143_s17  ;;  %85 = vrot.lane.b32.xlu1 %v114_v13, %s144_s18 }
  0x23   :  { %91 = vrot.lane.b32.xlu2 %v115_v14, %s145_s21 }
  0x5d   :  { %v32_v16 = vpop.permute.xlu2 %31  }
  0x65   :  { %v38_v17 = vpop.permute.xlu2 %37  }
  0x6d   :  { %v56_v18 = vpop.permute.xlu2 %55  }
  0x74   :  { %v8_v19 = vpop.permute.xlu0 %7   ;;  %v20_v20 = vpop.permute.xlu1 %19  }
  0x75   :  { %10 = vst.msk [vmem:[#allocation0] sm:$0x1] %vm9_vm1, %v8_v19   ;;  %v74_v21 = vpop.permute.xlu2 %73  }
  0x7c   :  { %v14_v22 = vpop.permute.xlu0 %13   ;;  %v26_v23 = vpop.permute.xlu1 %25  }
  0x7d   :  { %16 = vst.msk [vmem:[#allocation0] sm:$0x1] %vm15_vm2, %v14_v22   ;;  %v92_v24 = vpop.permute.xlu2 %91  }
  0x7e   :  { %22 = vst.msk [vmem:[#allocation0] sm:$0x1] %vm21_vm3, %v20_v20  }
  0x7f   :  { %28 = vst.msk [vmem:[#allocation0] sm:$0x1] %vm27_vm4, %v26_v23  }
  0x80   :  { %34 = vst.msk [vmem:[#allocation0] sm:$0x1] %vm33_vm5, %v32_v16  }
  0x81   :  { %40 = vst.msk [vmem:[#allocation0] sm:$0x1] %vm39_vm6, %v38_v17  }
  0x84   :  { %v44_v25 = vpop.permute.xlu0 %43   ;;  %v50_v26 = vpop.permute.xlu1 %49  }
  0x85   :  { %46 = vst.msk [vmem:[#allocation0] sm:$0x1] %vm45_vm7, %v44_v25  }
  0x86   :  { %52 = vst.msk [vmem:[#allocation0] sm:$0x1] %vm51_vm8, %v50_v26  }
  0x87   :  { %58 = vst.msk [vmem:[#allocation0] sm:$0x1] %vm57_vm9, %v56_v18  }
  0x8c   :  { %v62_v27 = vpop.permute.xlu0 %61   ;;  %v68_v28 = vpop.permute.xlu1 %67  }
  0x8d   :  { %64 = vst.msk [vmem:[#allocation0] sm:$0x1] %vm63_vm10, %v62_v27  }
  0x8e   :  { %70 = vst.msk [vmem:[#allocation0] sm:$0x1] %vm69_vm11, %v68_v28  }
  0x8f   :  { %76 = vst.msk [vmem:[#allocation0] sm:$0x1] %vm75_vm12, %v74_v21  }
  0x94   :  { %v80_v29 = vpop.permute.xlu0 %79   ;;  %v86_v30 = vpop.permute.xlu1 %85  }
  0x95   :  { %82 = vst.msk [vmem:[#allocation0] sm:$0x1] %vm81_vm13, %v80_v29  }
  0x96   :  { %88 = vst.msk [vmem:[#allocation0] sm:$0x1] %vm87_vm14, %v86_v30  }
  0x97   :  { %94 = vst.msk [vmem:[#allocation0] sm:$0x1] %vm93_vm15, %v92_v24  }
  0x9e   :  { %v97_v31 = vld [vmem:[#allocation0] sm:$0x1] }
  0x9f   :  { %100 = vst [vmem:[%s208_s1] sm:$0x1] %v97_v31 }

// kernel: double_conv.1
= control target key start
LH: loop header
LB: loop body
LE: loop exit
PB: predicated region body
PF: predicated region fallthrough
CT: control target
= control target key end

     0   :  { %v953_v56 = vmov 0.0   ;;  %s1198_s1 = inlined_call_operand.vmem [shape: bf16[3,128,128], index: 1, kind: input, shape index: {}]   ;;  %s1199_s0 = inlined_call_operand.vmem [shape: f32[2,18,128], index: 0, kind: input, shape index: {}]   ;;  %s1200_s2 = inlined_call_operand.vmem [shape: f32[1,128], index: 2, kind: input, shape index: {}]   ;;  %s1201_s3 = inlined_call_operand.vmem [shape: f32[1,128], index: 3, kind: input, shape index: {}]   ;;  %s1202_s4 = inlined_call_operand.vmem [shape: bf16[3,128,128], index: 4, kind: input, shape index: {}]   ;;  %s1203_s5 = inlined_call_operand.vmem [shape: f32[1,128], index: 5, kind: input, shape index: {}]   ;;  %s1204_s6 = inlined_call_operand.vmem [shape: f32[1,128], index: 6, kind: input, shape index: {}]   ;;  %s1205_s7 = inlined_call_operand.vmem [shape: f32[2,16,128], index: 7, kind: output, shape index: {}]  }
   0x1   :  { %v899_v0 = vld [vmem:[%s1198_s1 + $0x78] sm:$0xff]  ;;  %v898_v3 = vld [vmem:[%s1198_s1 + $0x70] sm:$0xff]  ;;  %v897_v6 = vld [vmem:[%s1198_s1 + $0x68] sm:$0xff]  ;;  %319 = vst [vmem:[#allocation2] sm:$0x1] %v953_v56 }
   0x2   :  { %v891_v1 = vld [vmem:[%s1198_s1 + $0x38] sm:$0xff]  ;;  %119 = vmatpush.bf16.msra.mxu0 %v899_v0  ;;  %v890_v4 = vld [vmem:[%s1198_s1 + $0x30] sm:$0xff]  ;;  %v889_v7 = vld [vmem:[%s1198_s1 + $0x28] sm:$0xff]  ;;  %320 = vst [vmem:[#allocation2 + $0x18] sm:$0x1] %v953_v56 }
   0x3   :  { %v907_v2 = vld [vmem:[%s1198_s1 + $0xb8] sm:$0xff]  ;;  %186 = vmatpush.bf16.msra.mxu1 %v891_v1  ;;  %v906_v5 = vld [vmem:[%s1198_s1 + $0xb0] sm:$0xff]  ;;  %v905_v8 = vld [vmem:[%s1198_s1 + $0xa8] sm:$0xff]  ;;  %321 = vst [vmem:[#allocation2 + $0x11] sm:$0x1] %v953_v56 }
   0x4   :  { %276 = vmatpush.bf16.msra.mxu2 %v907_v2  ;;  %v896_v9 = vld [vmem:[%s1198_s1 + $0x60] sm:$0xff]  ;;  %v895_v12 = vld [vmem:[%s1198_s1 + $0x58] sm:$0xff]  ;;  %v894_v15 = vld [vmem:[%s1198_s1 + $0x50] sm:$0xff]  ;;  %322 = vst [vmem:[#allocation2 + $0x29] sm:$0x1] %v953_v56 }
   0x5   :  { %v888_v10 = vld [vmem:[%s1198_s1 + $0x20] sm:$0xff]  ;;  %v887_v13 = vld [vmem:[%s1198_s1 + $0x18] sm:$0xff]  ;;  %v886_v16 = vld [vmem:[%s1198_s1 + $0x10] sm:$0xff] }
   0x6   :  { %120 = vmatpush.bf16.msra.mxu0 %v898_v3  ;;  %v904_v11 = vld [vmem:[%s1198_s1 + $0xa0] sm:$0xff]  ;;  %v903_v14 = vld [vmem:[%s1198_s1 + $0x98] sm:$0xff]  ;;  %v902_v17 = vld [vmem:[%s1198_s1 + $0x90] sm:$0xff] }
   0x7   :  { %187 = vmatpush.bf16.msra.mxu1 %v890_v4  ;;  %v893_v18 = vld [vmem:[%s1198_s1 + $0x48] sm:$0xff]  ;;  %v892_v21 = vld [vmem:[%s1198_s1 + $0x40] sm:$0xff]  ;;  %v28_v35 = vld [vmem:[%s1199_s0 + $0x18] sm:$0xff] }
   0x8   :  { %277 = vmatpush.bf16.msra.mxu2 %v906_v5  ;;  %v885_v19 = vld [vmem:[%s1198_s1 + $0x8] sm:$0xff]  ;;  %v884_v22 = vld [vmem:[%s1198_s1] sm:$0xff]  ;;  %v923_v42 = vld [vmem:[%s1202_s4 + $0x78] sm:$0xff] }
   0x9   :  { %v901_v20 = vld [vmem:[%s1198_s1 + $0x88] sm:$0xff]  ;;  %v26_v25 = vld [vmem:[%s1199_s0] sm:$0xff]  ;;  %420 = vmatpush.bf16.msra.mxu3 %v923_v42  ;;  %v922_v43 = vld [vmem:[%s1202_s4 + $0x70] sm:$0xff] }
   0xa   :  { %121 = vmatpush.bf16.msra.mxu0 %v897_v6  ;;  %v48_v23 = vld [vmem:[%s1199_s0 + $0x1] sm:$0xff]  ;;  %v49_v24 = vld [vmem:[%s1199_s0 + $0x9] sm:$0xff]  ;;  %v50_v33 = vld [vmem:[%s1199_s0 + $0x19] sm:$0xff] }
   0xb   :  { %188 = vmatpush.bf16.msra.mxu1 %v889_v7  ;;  %v27_v26 = vld [vmem:[%s1199_s0 + $0x8] sm:$0xff]  ;;  %v900_v27 = vld [vmem:[%s1198_s1 + $0x80] sm:$0xff]  ;;  %v52_v30 = vpack.c.bf16 %v49_v24, %v48_v23  ;;  %v915_v44 = vld [vmem:[%s1202_s4 + $0x38] sm:$0xff] }
   0xc   :  { %278 = vmatpush.bf16.msra.mxu2 %v905_v8  ;;  %v205_v28 = vld [vmem:[%s1199_s0 + $0x2] sm:$0xff]  ;;  %v206_v29 = vld [vmem:[%s1199_s0 + $0xa] sm:$0xff]  ;;  %v30_v31 = vpack.c.bf16 %v27_v26, %v26_v25  ;;  %v207_v37 = vld [vmem:[%s1199_s0 + $0x1a] sm:$0xff] }
   0xd   :  { %v209_v32 = vpack.c.bf16 %v206_v29, %v205_v28  ;;  %v51_v34 = vld [vmem:[%s1199_s0 + $0x21] sm:$0xff]  ;;  %421 = vmatpush.bf16.msra.mxu3 %v922_v43  ;;  %v931_v45 = vld [vmem:[%s1202_s4 + $0xb8] sm:$0xff]  ;;  %v914_v47 = vld [vmem:[%s1202_s4 + $0x30] sm:$0xff] }
   0xe   :  { %122 = vmatpush.bf16.msra.mxu0 %v896_v9  ;;  %v29_v36 = vld [vmem:[%s1199_s0 + $0x20] sm:$0xff]  ;;  %v53_v39 = vpack.c.bf16 %v51_v34, %v50_v33  ;;  %v921_v46 = vld [vmem:[%s1202_s4 + $0x68] sm:$0xff]  ;;  %v930_v48 = vld [vmem:[%s1202_s4 + $0xb0] sm:$0xff] }
   0xf   :  { %189 = vmatpush.bf16.msra.mxu1 %v888_v10  ;;  %v208_v38 = vld [vmem:[%s1199_s0 + $0x22] sm:$0xff]  ;;  %v31_v40 = vpack.c.bf16 %v29_v36, %v28_v35  ;;  %v919_v52 = vld [vmem:[%s1202_s4 + $0x58] sm:$0xff]  ;;  %v918_v55 = vld [vmem:[%s1202_s4 + $0x50] sm:$0xff] }
  0x10   :  { %279 = vmatpush.bf16.msra.mxu2 %v904_v11  ;;  %v210_v41 = vpack.c.bf16 %v208_v38, %v207_v37  ;;  %v920_v49 = vld [vmem:[%s1202_s4 + $0x60] sm:$0xff]  ;;  %v913_v50 = vld [vmem:[%s1202_s4 + $0x28] sm:$0xff]  ;;  %v911_v57 = vld [vmem:[%s1202_s4 + $0x18] sm:$0xff] }
  0x11   :  { %422 = vmatpush.bf16.msra.mxu3 %v921_v46  ;;  %v929_v51 = vld [vmem:[%s1202_s4 + $0xa8] sm:$0xff]  ;;  %v912_v53 = vld [vmem:[%s1202_s4 + $0x20] sm:$0xff]  ;;  %v927_v58 = vld [vmem:[%s1202_s4 + $0x98] sm:$0xff] }
  0x12   :  { %123 = vmatpush.bf16.msra.mxu0 %v895_v12  ;;  %v928_v54 = vld [vmem:[%s1202_s4 + $0xa0] sm:$0xff]  ;;  %v917_v59 = vld [vmem:[%s1202_s4 + $0x48] sm:$0xff]  ;;  %v910_v60 = vld [vmem:[%s1202_s4 + $0x10] sm:$0xff] }
  0x13   :  { %190 = vmatpush.bf16.msra.mxu1 %v887_v13  ;;  %v926_v61 = vld [vmem:[%s1202_s4 + $0x90] sm:$0xff]  ;;  %v916_v62 = vld [vmem:[%s1202_s4 + $0x40] sm:$0xff]  ;;  %v909_v63 = vld [vmem:[%s1202_s4 + $0x8] sm:$0xff] }
  0x14   :  { %280 = vmatpush.bf16.msra.mxu2 %v903_v14  ;;  %v925_v0 = vld [vmem:[%s1202_s4 + $0x88] sm:$0xff]  ;;  %v908_v1 = vld [vmem:[%s1202_s4] sm:$0xff] }
  0x15   :  { %423 = vmatpush.bf16.msra.mxu3 %v920_v49  ;;  %v924_v2 = vld [vmem:[%s1202_s4 + $0x80] sm:$0xff] }
  0x16   :  { %124 = vmatpush.bf16.msra.mxu0 %v894_v15  ;;  %v949_v6 = vld [vmem:[%s1200_s2] ss:$0 sm:$0xff] }
  0x17   :  { %191 = vmatpush.bf16.msra.mxu1 %v886_v16  ;;  %v950_v9 = vld [vmem:[%s1201_s3] ss:$0 sm:$0xff] }
  0x18   :  { %281 = vmatpush.bf16.msra.mxu2 %v902_v17 }
  0x19   :  { %424 = vmatpush.bf16.msra.mxu3 %v919_v52 }
  0x1a   :  { %125 = vmatpush.bf16.msra.mxu0 %v893_v18 }
  0x1b   :  { %192 = vmatpush.bf16.msra.mxu1 %v885_v19 }
  0x1c   :  { %282 = vmatpush.bf16.msra.mxu2 %v901_v20 }
  0x1d   :  { %425 = vmatpush.bf16.msra.mxu3 %v918_v55  ;;  %v951_v55 = vld [vmem:[%s1203_s5] ss:$0 sm:$0xff] }
  0x1e   :  { %126 = vmatpush.bf16.msra.mxu0 %v892_v21 }
  0x1f   :  { %193 = vmatpush.bf16.msra.mxu1 %v884_v22 }
  0x20   :  { %283 = vmatpush.bf16.msra.mxu2 %v900_v27 }
  0x21   :  { %127 = vmatmul.bf16.vlgmr.msra.gmra.mxu0 %v52_v30  ;;  %426 = vmatpush.bf16.msra.mxu3 %v917_v59 }
  0x22   :  { %194 = vmatmul.bf16.vlgmr.msra.gmra.mxu1 %v30_v31  ;;  %487 = vmatpush.bf16.msrb.mxu0 %v915_v44 }
  0x23   :  { %284 = vmatmul.bf16.vlgmr.msra.gmra.mxu2 %v209_v32  ;;  %577 = vmatpush.bf16.msrb.mxu1 %v931_v45 }
  0x24   :  { %932 = vmatpush.bf16.msrb.mxu2 %v915_v44 }
  0x25   :  { %427 = vmatpush.bf16.msra.mxu3 %v916_v62 }
  0x26   :  { %488 = vmatpush.bf16.msrb.mxu0 %v914_v47 }
  0x27   :  { %578 = vmatpush.bf16.msrb.mxu1 %v930_v48 }
  0x28   :  { %933 = vmatpush.bf16.msrb.mxu2 %v914_v47 }
  0x29   :  { %940 = vmatpush.bf16.msrb.mxu3 %v931_v45 }
  0x2a   :  { %489 = vmatpush.bf16.msrb.mxu0 %v913_v50 }
  0x2b   :  { %579 = vmatpush.bf16.msrb.mxu1 %v929_v51 }
  0x2c   :  { %934 = vmatpush.bf16.msrb.mxu2 %v913_v50 }
  0x2d   :  { %941 = vmatpush.bf16.msrb.mxu3 %v930_v48 }
  0x2e   :  { %490 = vmatpush.bf16.msrb.mxu0 %v912_v53 }
  0x2f   :  { %580 = vmatpush.bf16.msrb.mxu1 %v928_v54 }
  0x30   :  { %935 = vmatpush.bf16.msrb.mxu2 %v912_v53 }
  0x31   :  { %132 = vmatmul.bf16.gmra.mxu0 %v53_v39  ;;  %942 = vmatpush.bf16.msrb.mxu3 %v929_v51 }
  0x32   :  { %199 = vmatmul.bf16.gmra.mxu1 %v31_v40  ;;  %491 = vmatpush.bf16.msrb.mxu0 %v911_v57 }
  0x33   :  { %289 = vmatmul.bf16.gmra.mxu2 %v210_v41  ;;  %581 = vmatpush.bf16.msrb.mxu1 %v927_v58 }
  0x34   :  { %936 = vmatpush.bf16.msrb.mxu2 %v911_v57  ;;  %v952_v57 = vld [vmem:[%s1204_s6] ss:$0 sm:$0xff] }
  0x35   :  { %943 = vmatpush.bf16.msrb.mxu3 %v928_v54 }
  0x36   :  { %492 = vmatpush.bf16.msrb.mxu0 %v910_v60 }
  0x37   :  { %582 = vmatpush.bf16.msrb.mxu1 %v926_v61 }
  0x38   :  { %937 = vmatpush.bf16.msrb.mxu2 %v910_v60 }
  0x39   :  { %944 = vmatpush.bf16.msrb.mxu3 %v927_v58 }
  0x3a   :  { %493 = vmatpush.bf16.msrb.mxu0 %v909_v63 }
  0x3b   :  { %583 = vmatpush.bf16.msrb.mxu1 %v925_v0 }
  0x3c   :  { %938 = vmatpush.bf16.msrb.mxu2 %v909_v63 }
  0x3d   :  { %945 = vmatpush.bf16.msrb.mxu3 %v926_v61 }
  0x3e   :  { %494 = vmatpush.bf16.msrb.mxu0 %v908_v1 }
  0x3f   :  { %584 = vmatpush.bf16.msrb.mxu1 %v924_v2 }
  0x40   :  { %939 = vmatpush.bf16.msrb.mxu2 %v908_v1 }
  0x41   :  { %946 = vmatpush.bf16.msrb.mxu3 %v925_v0 }
  0x45   :  { %947 = vmatpush.bf16.msrb.mxu3 %v924_v2 }
  0x9e   :  { %v128_v3 = vpop.f32.mrf.mxu0 }
  0x9f   :  { %v195_v4 = vpop.f32.mrf.mxu1 }
  0xa0   :  { %v196_v5 = vadd.f32 %v195_v4, %v128_v3 }
  0xa6   :  { %v285_v7 = vpop.f32.mrf.mxu2  ;;  %v130_v10 = vpop.f32.mrf.mxu0 }
  0xa7   :  { %v295_v8 = vadd.f32 %v285_v7, %v196_v5  ;;  %v197_v11 = vpop.f32.mrf.mxu1 }
  0xa8   :  { %v198_v15 = vadd.f32 %v197_v11, %v130_v10 }
  0xa9   :  { %v303_v12 = vmul.f32 %v949_v6, %v295_v8 }
  0xab   :  { %v311_v13 = vadd.f32 %v950_v9, %v303_v12 }
  0xad   :  { %v315_v14 = vmax.f32 %v311_v13, 0.0 }
  0xae   :  { %v287_v16 = vpop.f32.mrf.mxu2  ;;  %v133_v18 = vpop.f32.mrf.mxu0 }
  0xaf   :  { %323 = vst [vmem:[#allocation2 + $0x1] sm:$0xff] %v315_v14  ;;  %v296_v17 = vadd.f32 %v287_v16, %v198_v15  ;;  %v200_v19 = vpop.f32.mrf.mxu1 }
  0xb0   :  { %v201_v22 = vadd.f32 %v200_v19, %v133_v18 }
  0xb1   :  { %v304_v20 = vmul.f32 %v949_v6, %v296_v17 }
  0xb3   :  { %v312_v21 = vadd.f32 %v950_v9, %v304_v20 }
  0xb5   :  { %v316_v23 = vmax.f32 %v312_v21, 0.0 }
  0xb6   :  { %v290_v24 = vpop.f32.mrf.mxu2  ;;  %v135_v28 = vpop.f32.mrf.mxu0  ;;  %v327_v33 = vld [vmem:[#allocation2] sm:$0xff] }
  0xb7   :  { %324 = vst [vmem:[#allocation2 + $0x9] sm:$0xff] %v316_v23  ;;  %v297_v25 = vadd.f32 %v290_v24, %v201_v22  ;;  %v353_v26 = vpack.c.bf16 %v316_v23, %v315_v14  ;;  %v202_v29 = vpop.f32.mrf.mxu1 }
  0xb8   :  { %v203_v32 = vadd.f32 %v202_v29, %v135_v28 }
  0xb9   :  { %v305_v27 = vmul.f32 %v949_v6, %v297_v25  ;;  %428 = vmatmul.bf16.vlgmr.msra.gmra.mxu3 %v353_v26 }
  0xbb   :  { %v313_v30 = vadd.f32 %v950_v9, %v305_v27 }
  0xbd   :  { %v317_v31 = vmax.f32 %v313_v30, 0.0 }
  0xbe   :  { %v292_v34 = vpop.f32.mrf.mxu2  ;;  %v328_v35 = vld [vmem:[#allocation2 + $0x8] sm:$0xff] }
  0xbf   :  { %v506_v36 = vld [vmem:[#allocation2 + $0x2] sm:$0xff]  ;;  %v507_v37 = vld [vmem:[#allocation2 + $0xa] sm:$0xff]  ;;  %325 = vst [vmem:[#allocation2 + $0x19] sm:$0xff] %v317_v31  ;;  %v298_v38 = vadd.f32 %v292_v34, %v203_v32  ;;  %v331_v39 = vpack.c.bf16 %v328_v35, %v327_v33 }
  0xc0   :  { %v510_v40 = vpack.c.bf16 %v507_v37, %v506_v36 }
  0xc1   :  { %v306_v41 = vmul.f32 %v949_v6, %v298_v38  ;;  %495 = vmatmul.bf16.vlgmr.msrb.gmra.mxu0 %v331_v39 }
  0xc2   :  { %585 = vmatmul.bf16.vlgmr.msrb.gmra.mxu1 %v510_v40 }
  0xc3   :  { %v314_v42 = vadd.f32 %v950_v9, %v306_v41 }
  0xc5   :  { %v318_v43 = vmax.f32 %v314_v42, 0.0 }
  0xc6   :  { %v329_v45 = vld [vmem:[#allocation2 + $0x18] sm:$0xff] }
  0xc7   :  { %326 = vst [vmem:[#allocation2 + $0x21] sm:$0xff] %v318_v43  ;;  %v354_v44 = vpack.c.bf16 %v318_v43, %v317_v31 }
  0xc9   :  { %433 = vmatmul.bf16.gmra.mxu3 %v354_v44 }
  0xce   :  { %v330_v46 = vld [vmem:[#allocation2 + $0x20] sm:$0xff] }
  0xcf   :  { %v332_v47 = vpack.c.bf16 %v330_v46, %v329_v45  ;;  %v508_v48 = vld [vmem:[#allocation2 + $0x1a] sm:$0xff]  ;;  %v509_v49 = vld [vmem:[#allocation2 + $0x22] sm:$0xff] }
  0xd0   :  { %v511_v50 = vpack.c.bf16 %v509_v49, %v508_v48 }
  0xd1   :  { %500 = vmatmul.bf16.vlgmr.msrb.gmra.mxu2 %v332_v47 }
  0xd9   :  { %590 = vmatmul.bf16.vlgmr.msrb.gmra.mxu3 %v511_v50 }
 0x13c   :  { %v429_v51 = vpop.f32.mrf.mxu3 }
 0x13e   :  { %v496_v52 = vpop.f32.mrf.mxu0 }
 0x13f   :  { %v586_v53 = vpop.f32.mrf.mxu1  ;;  %v497_v54 = vadd.f32 %v496_v52, %v429_v51 }
 0x141   :  { %v596_v56 = vadd.f32 %v586_v53, %v497_v54 }
 0x143   :  { %v604_v58 = vmul.f32 %v951_v55, %v596_v56 }
 0x144   :  { %v431_v59 = vpop.f32.mrf.mxu3 }
 0x145   :  { %v612_v60 = vadd.f32 %v952_v57, %v604_v58 }
 0x146   :  { %v498_v61 = vpop.f32.mrf.mxu0 }
 0x147   :  { %v616_v62 = vmax.f32 %v612_v60, 0.0  ;;  %v499_v63 = vadd.f32 %v498_v61, %v431_v59  ;;  %v588_v0 = vpop.f32.mrf.mxu1 }
 0x149   :  { %620 = vst [vmem:[%s1205_s7] sm:$0xff] %v616_v62  ;;  %v597_v1 = vadd.f32 %v588_v0, %v499_v63 }
 0x14b   :  { %v605_v2 = vmul.f32 %v951_v55, %v597_v1 }
 0x14c   :  { %v434_v3 = vpop.f32.mrf.mxu3 }
 0x14d   :  { %v613_v4 = vadd.f32 %v952_v57, %v605_v2 }
 0x14f   :  { %v617_v5 = vmax.f32 %v613_v4, 0.0 }
 0x151   :  { %621 = vst [vmem:[%s1205_s7 + $0x8] sm:$0xff] %v617_v5 }
 0x154   :  { %v436_v6 = vpop.f32.mrf.mxu3  ;;  %v501_v7 = vpop.f32.mrf.mxu2 }
 0x155   :  { %v502_v8 = vadd.f32 %v501_v7, %v434_v3 }
 0x15c   :  { %v591_v9 = vpop.f32.mrf.mxu3  ;;  %v503_v12 = vpop.f32.mrf.mxu2 }
 0x15d   :  { %v598_v10 = vadd.f32 %v591_v9, %v502_v8  ;;  %v504_v14 = vadd.f32 %v503_v12, %v436_v6 }
 0x15f   :  { %v606_v11 = vmul.f32 %v951_v55, %v598_v10 }
 0x161   :  { %v614_v13 = vadd.f32 %v952_v57, %v606_v11 }
 0x163   :  { %v618_v15 = vmax.f32 %v614_v13, 0.0 }
 0x164   :  { %v593_v16 = vpop.f32.mrf.mxu3 }
 0x165   :  { %622 = vst [vmem:[%s1205_s7 + $0x10] sm:$0xff] %v618_v15  ;;  %v599_v17 = vadd.f32 %v593_v16, %v504_v14 }
 0x167   :  { %v607_v18 = vmul.f32 %v951_v55, %v599_v17 }
 0x169   :  { %v615_v19 = vadd.f32 %v952_v57, %v607_v18 }
 0x16b   :  { %v619_v20 = vmax.f32 %v615_v19, 0.0 }
 0x16d   :  { %623 = vst [vmem:[%s1205_s7 + $0x18] sm:$0xff] %v619_v20 }

</bundles_post_ra>
